<compile_context>
chip_gen: v5e
topology: v5e:2x2
jax: 0.10.0
libtpu: 0.0.40
codegen_flags: <defaults>
</compile_context>

<pallas_src>
from typing import List

import jax
import jax.numpy as jnp
from jax.experimental import pallas as pl
from jax.experimental.pallas import tpu as pltpu

_LN_EPS = 1e-5  # torch.nn.LayerNorm default


# ----------------------------------------------------------------------------
# In-kernel helpers
# ----------------------------------------------------------------------------
def _dot(a, b):
    return jnp.dot(a, b, preferred_element_type=jnp.float32)


def _ln_relu(y, gamma, beta):
    """relu(layernorm(y)); single-pass moments in f32 (fine at these scales)."""
    inv_n = 1.0 / y.shape[-1]
    s1 = jnp.sum(y, axis=-1, keepdims=True)
    s2 = jnp.sum(y * y, axis=-1, keepdims=True)
    mean = s1 * inv_n
    var = jnp.maximum(s2 * inv_n - mean * mean, 0.0)
    yn = (y - mean) * jax.lax.rsqrt(var + _LN_EPS)
    return jnp.maximum(yn * gamma + beta, 0.0)


def _consume_rest(it, spec):
    """Read the packed / separate "rest" hidden layers from the ref iterator.

    Returns a list of (W, bias, gamma, beta) jnp values."""
    kind, n = spec
    layers = []
    if n == 0:
        return layers
    if kind == "packed":
        w_stack = next(it)       # (n, D_in, D_out)
        lnb_stack = next(it)     # (3*n, D_out)
        for i in range(n):
            layers.append((w_stack[i],
                           lnb_stack[3 * i:3 * i + 1, :],
                           lnb_stack[3 * i + 1:3 * i + 2, :],
                           lnb_stack[3 * i + 2:3 * i + 3, :]))
    else:
        for _ in range(n):
            w_ref, lnb_ref = next(it), next(it)
            layers.append((w_ref[...], lnb_ref[0:1, :],
                           lnb_ref[1:2, :], lnb_ref[2:3, :]))
    return layers


# ----------------------------------------------------------------------------
# Fused kernel (built per static config)
# ----------------------------------------------------------------------------
def _make_kernel(dyn_rest_spec, rew_rest_spec):
    def kernel(*refs):
        it = iter(refs)
        hs_ref = next(it)        # (A*B, H)    agent-major rows
        act_ref = next(it)       # (A*B, Act)  agent-major rows
        actr_ref = next(it)      # (B, A*Act)  batch rows, agent-blocked lanes
        dw0_ref = next(it)       # (H+Act, D0) dyn layer-0 weight (whole)
        dlnb0 = next(it)         # (3, D0)     rows: bias, gamma, beta
        dyn_rest = _consume_rest(it, dyn_rest_spec)
        dwout = next(it)         # (D_last+1, H) rows 0..D_last-1 = W, last = b
        rw0h_ref = next(it)      # (A, H, R0)  per-agent hidden-part weights
        rw0a_ref = next(it)      # (A*Act, R0) stacked action-part weights
        rlnb0 = next(it)         # (3, R0)
        rew_rest = _consume_rest(it, rew_rest_spec)
        rhead = next(it)         # (2, R_last) row0 = head weight, row1[0]=bias
        next_ref = next(it)      # out (A*B, H)
        rew_ref = next(it)       # out (B, 1)

        H = hs_ref.shape[-1]
        Act = act_ref.shape[-1]
        A = rw0h_ref.shape[0]
        B = actr_ref.shape[0]
        D_last = dwout.shape[0] - 1

        hs = hs_ref[...]
        act = act_ref[...]

        # ---- dynamic_net over all A*B rows in one shot (shared weights).
        # Split-weight matmul replaces concat([hs, act], -1) @ W0.
        y = (_dot(hs, dw0_ref[0:H, :]) + _dot(act, dw0_ref[H:H + Act, :])
             + dlnb0[0:1, :])
        x = _ln_relu(y, dlnb0[1:2, :], dlnb0[2:3, :])
        for w, b, g, bt in dyn_rest:
            x = _ln_relu(_dot(x, w) + b, g, bt)

        # Output projection fused with the `+= previous_states` residual; one
        # lane-dense full-block store.
        nxt = _dot(x, dwout[0:D_last, :]) + dwout[D_last:D_last + 1, :] + hs
        next_ref[...] = nxt

        # ---- reward_net.  Action part: one matmul.  Hidden part: A small
        # matmuls over contiguous leading-row slices read back from next_ref.
        r = _dot(actr_ref[...], rw0a_ref[...])                  # (B, R0)
        for a in range(A):
            r = r + _dot(next_ref[a * B:(a + 1) * B, :], rw0h_ref[a])
        x = _ln_relu(r + rlnb0[0:1, :], rlnb0[1:2, :], rlnb0[2:3, :])
        for w, b, g, bt in rew_rest:
            x = _ln_relu(_dot(x, w) + b, g, bt)

        # Scalar head: VPU multiply + lane reduction (no 1-lane MXU result).
        rew_ref[...] = (jnp.sum(x * rhead[0:1, :], axis=-1, keepdims=True)
                        + rhead[1:2, 0:1])

    return kernel


# ----------------------------------------------------------------------------
# Parameter construction (mirrors torch shapes / init ranges; weights stored
# transposed as (in_features, out_features) so the kernel does x @ W + b).
# ----------------------------------------------------------------------------
def _init_mlp_params(key, input_size: int, layer_sizes: List[int],
                     output_size: int):
    hidden = []
    in_size = input_size
    for out_size in layer_sizes:
        key, kw, kb = jax.random.split(key, 3)
        s = in_size ** -0.5
        w = jax.random.uniform(kw, (in_size, out_size), jnp.float32, -s, s)
        b = jax.random.uniform(kb, (1, out_size), jnp.float32, -s, s)
        lnb = jnp.concatenate([b, jnp.ones((1, out_size), jnp.float32),
                               jnp.zeros((1, out_size), jnp.float32)], axis=0)
        hidden.append((w, lnb))
        in_size = out_size
    key, kw, kb = jax.random.split(key, 3)
    s = in_size ** -0.5
    out_w = jax.random.uniform(kw, (in_size, output_size), jnp.float32, -s, s)
    out_b = jax.random.uniform(kb, (1, output_size), jnp.float32, -s, s)
    return hidden, (out_w, out_b)


def _pack_rest(rest):
    """Stack equal-shaped hidden layers 1..N into (n,D,D)/(3n,D); otherwise
    keep them as separate (W, lnb) pairs."""
    if len(rest) == 0:
        return ()
    if len({w.shape for w, _ in rest}) == 1:
        return {"w": jnp.stack([w for w, _ in rest], axis=0),
                "lnb": jnp.concatenate([lnb for _, lnb in rest], axis=0)}
    return tuple(rest)


def init_dynamics_params(key, num_agents, hidden_state_size, action_space_size,
                         fc_dynamic_layers, fc_reward_layers):
    assert len(fc_dynamic_layers) >= 1 and len(fc_reward_layers) >= 1
    H, Act, A = hidden_state_size, action_space_size, num_agents
    k_dyn, k_rew = jax.random.split(key)
    dyn_hidden, (dyn_ow, dyn_ob) = _init_mlp_params(
        k_dyn, H + Act, fc_dynamic_layers, H)
    rew_hidden, (rew_ow, rew_ob) = _init_mlp_params(
        k_rew, A * (H + Act), fc_reward_layers, 1)

    dw0, dlnb0 = dyn_hidden[0]
    # dyn output projection: pack weight rows + bias row into one slab.
    dwout = jnp.concatenate([dyn_ow, dyn_ob], axis=0)            # (D_last+1, H)

    # Reward layer 0: torch flattens reward_input per-agent interleaved
    # [next_0, act_0, next_1, act_1, ...]; split its weight accordingly into a
    # per-agent hidden part (A, H, R0) and a stacked action part (A*Act, R0).
    rw0, rlnb0 = rew_hidden[0]
    R0 = rw0.shape[1]
    rw0_3 = rw0.reshape(A, H + Act, R0)
    rw0_h = rw0_3[:, :H, :]
    rw0_a = rw0_3[:, H:, :].reshape(A * Act, R0)

    # Reward scalar head: row 0 = weight row, row 1 = [bias, 0, ...].
    R_last = rew_ow.shape[0]
    bias_row = jnp.zeros((1, R_last), jnp.float32).at[0, 0].set(rew_ob[0, 0])
    rhead = jnp.concatenate([rew_ow.reshape(1, R_last), bias_row], axis=0)

    return {
        "dyn_w0": dw0, "dyn_lnb0": dlnb0,
        "dyn_rest": _pack_rest(dyn_hidden[1:]), "dyn_out": dwout,
        "rew_w0_h": rw0_h, "rew_w0_a": rw0_a, "rew_lnb0": rlnb0,
        "rew_rest": _pack_rest(rew_hidden[1:]), "rew_head": rhead,
    }


# ----------------------------------------------------------------------------
# Forward pass: one pallas_call, everything VMEM-resident, no grid.
# ----------------------------------------------------------------------------
def _rest_operands(rest):
    """Trace-time flattening of rest-layer pytree -> operand list + static spec."""
    if isinstance(rest, dict):
        return [rest["w"], rest["lnb"]], ("packed", int(rest["w"].shape[0]))
    if len(rest) == 0:
        return [], ("packed", 0)
    ops = []
    for w, lnb in rest:
        ops += [w, lnb]
    return ops, ("separate", len(rest))


@jax.jit
def dynamics_forward(params, hidden_states, actions):
    B, A, H = hidden_states.shape
    Act = actions.shape[-1]

    # Agent-major (A*B, feat) rows: the shared dynamic_net is row-order
    # agnostic, and agent-major makes the reward net's per-agent row blocks
    # contiguous.  These transposes are tiny wrapper-side layout plumbing.
    hs_am = hidden_states.transpose(1, 0, 2).reshape(A * B, H)
    act_am = actions.transpose(1, 0, 2).reshape(A * B, Act)
    act_r = actions.reshape(B, A * Act)          # free view, agent-blocked lanes

    dyn_rest_ops, dyn_rest_spec = _rest_operands(params["dyn_rest"])
    rew_rest_ops, rew_rest_spec = _rest_operands(params["rew_rest"])

    operands = ([hs_am, act_am, act_r, params["dyn_w0"], params["dyn_lnb0"]]
                + dyn_rest_ops
                + [params["dyn_out"], params["rew_w0_h"], params["rew_w0_a"],
                   params["rew_lnb0"]]
                + rew_rest_ops
                + [params["rew_head"]])

    vmem = lambda: pl.BlockSpec(memory_space=pltpu.MemorySpace.VMEM)
    # NOTE: when B*A grows to a few hundred rows, switch to a 1-D "parallel"
    # grid over the row axis (constant index_map for weights) to use both v7x
    # TensorCores and respect its 64 MiB VMEM; a single un-gridded call is
    # optimal at these sizes.
    next_flat, reward = pl.pallas_call(
        _make_kernel(dyn_rest_spec, rew_rest_spec),
        out_shape=(jax.ShapeDtypeStruct((A * B, H), jnp.float32),
                   jax.ShapeDtypeStruct((B, 1), jnp.float32)),
        in_specs=[vmem() for _ in operands],
        out_specs=(vmem(), vmem()),
    )(*operands)

    next_states = next_flat.reshape(A, B, H).transpose(1, 0, 2)
    return next_states, reward


# ----------------------------------------------------------------------------
# Pure-JAX reference (mirrors the torch module exactly) for a sanity check.
# ----------------------------------------------------------------------------
_HI = jax.lax.Precision.HIGHEST


def _layer_norm_ref(x, gamma, beta):
    mean = jnp.mean(x, axis=-1, keepdims=True)
    var = jnp.mean((x - mean) ** 2, axis=-1, keepdims=True)
    return (x - mean) / jnp.sqrt(var + _LN_EPS) * gamma + beta


def _unpack_rest(rest):
    if isinstance(rest, dict):
        n = rest["w"].shape[0]
        return [(rest["w"][i], rest["lnb"][3 * i:3 * i + 3]) for i in range(n)]
    return list(rest)


def _mlp_ref(x, w0, lnb0, rest, w_out, b_out):
    def block(h, w, lnb):
        y = jnp.dot(h, w, precision=_HI) + lnb[0:1]
        return jnp.maximum(_layer_norm_ref(y, lnb[1:2], lnb[2:3]), 0.0)

    x = block(x, w0, lnb0)
    for w, lnb in _unpack_rest(rest):
        x = block(x, w, lnb)
    return jnp.dot(x, w_out, precision=_HI) + b_out


def _reference_forward(params, hidden_states, actions):
    B, A, H = hidden_states.shape
    Act = actions.shape[-1]

    x = jnp.concatenate([hidden_states, actions], -1).reshape(B * A, H + Act)
    dwout = params["dyn_out"]
    nxt = _mlp_ref(x, params["dyn_w0"], params["dyn_lnb0"], params["dyn_rest"],
                   dwout[:-1, :], dwout[-1:, :]).reshape(B, A, H) + hidden_states

    R0 = params["rew_w0_h"].shape[-1]
    rw0 = jnp.concatenate(
        [params["rew_w0_h"], params["rew_w0_a"].reshape(A, Act, R0)],
        axis=1).reshape(A * (H + Act), R0)
    rhead = params["rew_head"]
    r_in = jnp.concatenate([nxt, actions], -1).reshape(B, A * (H + Act))
    reward = _mlp_ref(r_in, rw0, params["rew_lnb0"], params["rew_rest"],
                      rhead[0:1, :].T, rhead[1:2, 0:1])
    return nxt, reward


# ----------------------------------------------------------------------------
if __name__ == "__main__":
    batch_size = 2
    num_agents = 2
    hidden_state_size = 32
    action_space_size = 8
    fc_dynamic_layers = [64, 64]
    fc_reward_layers = [32, 32]

    key = jax.random.PRNGKey(0)
    k_params, k_h, k_a = jax.random.split(key, 3)

    params = init_dynamics_params(
        k_params, num_agents, hidden_state_size, action_space_size,
        fc_dynamic_layers, fc_reward_layers)

    hidden_states = jax.random.normal(
        k_h, (batch_size, num_agents, hidden_state_size), jnp.float32)
    actions = jax.random.normal(
        k_a, (batch_size, num_agents, action_space_size), jnp.float32)

    next_states, reward = dynamics_forward(params, hidden_states, actions)
    jax.block_until_ready((next_states, reward))

    assert next_states.shape == (batch_size, num_agents, hidden_state_size)
    assert reward.shape == (batch_size, 1)

    ref_next, ref_reward = _reference_forward(params, hidden_states, actions)
    assert jnp.allclose(next_states, ref_next, atol=1e-3, rtol=1e-3), \
        float(jnp.max(jnp.abs(next_states - ref_next)))
    assert jnp.allclose(reward, ref_reward, atol=1e-3, rtol=1e-3), \
        float(jnp.max(jnp.abs(reward - ref_reward)))

    print("KERNEL_OK")
</pallas_src>

<mosaic_0001>
module attributes {stable_mosaic.version = 11 : i64} {
  func.func @kernel(%arg0: memref<4x32xf32, #tpu.memory_space<vmem>>, %arg1: memref<4x8xf32, #tpu.memory_space<vmem>>, %arg2: memref<2x16xf32, #tpu.memory_space<vmem>>, %arg3: memref<40x64xf32, #tpu.memory_space<vmem>>, %arg4: memref<3x64xf32, #tpu.memory_space<vmem>>, %arg5: memref<1x64x64xf32, #tpu.memory_space<vmem>>, %arg6: memref<3x64xf32, #tpu.memory_space<vmem>>, %arg7: memref<65x32xf32, #tpu.memory_space<vmem>>, %arg8: memref<2x32x32xf32, #tpu.memory_space<vmem>>, %arg9: memref<16x32xf32, #tpu.memory_space<vmem>>, %arg10: memref<3x32xf32, #tpu.memory_space<vmem>>, %arg11: memref<1x32x32xf32, #tpu.memory_space<vmem>>, %arg12: memref<3x32xf32, #tpu.memory_space<vmem>>, %arg13: memref<2x32xf32, #tpu.memory_space<vmem>>, %arg14: memref<4x32xf32, #tpu.memory_space<vmem>>, %arg15: memref<2x1xf32, #tpu.memory_space<vmem>>) attributes {dimension_semantics = [], scalar_prefetch = 0 : i64, scratch_operands = 0 : i64, tpu.core_type = #tpu.core_type<tc>} {
    %c0 = arith.constant 0 : index
    %c0_0 = arith.constant 0 : index
    %c0_1 = arith.constant 0 : index
    %0 = vector.load %arg5[%c0, %c0_0, %c0_1] : memref<1x64x64xf32, #tpu.memory_space<vmem>>, vector<1x64x64xf32>
    %1 = vector.shape_cast %0 : vector<1x64x64xf32> to vector<64x64xf32>
    %c0_2 = arith.constant 0 : index
    %c0_3 = arith.constant 0 : index
    %2 = vector.load %arg6[%c0_2, %c0_3] : memref<3x64xf32, #tpu.memory_space<vmem>>, vector<1x64xf32>
    %c1 = arith.constant 1 : index
    %c0_4 = arith.constant 0 : index
    %3 = vector.load %arg6[%c1, %c0_4] : memref<3x64xf32, #tpu.memory_space<vmem>>, vector<1x64xf32>
    %c2 = arith.constant 2 : index
    %c0_5 = arith.constant 0 : index
    %4 = vector.load %arg6[%c2, %c0_5] : memref<3x64xf32, #tpu.memory_space<vmem>>, vector<1x64xf32>
    %c0_6 = arith.constant 0 : index
    %c0_7 = arith.constant 0 : index
    %c0_8 = arith.constant 0 : index
    %5 = vector.load %arg11[%c0_6, %c0_7, %c0_8] : memref<1x32x32xf32, #tpu.memory_space<vmem>>, vector<1x32x32xf32>
    %6 = vector.shape_cast %5 : vector<1x32x32xf32> to vector<32x32xf32>
    %c0_9 = arith.constant 0 : index
    %c0_10 = arith.constant 0 : index
    %7 = vector.load %arg12[%c0_9, %c0_10] : memref<3x32xf32, #tpu.memory_space<vmem>>, vector<1x32xf32>
    %c1_11 = arith.constant 1 : index
    %c0_12 = arith.constant 0 : index
    %8 = vector.load %arg12[%c1_11, %c0_12] : memref<3x32xf32, #tpu.memory_space<vmem>>, vector<1x32xf32>
    %c2_13 = arith.constant 2 : index
    %c0_14 = arith.constant 0 : index
    %9 = vector.load %arg12[%c2_13, %c0_14] : memref<3x32xf32, #tpu.memory_space<vmem>>, vector<1x32xf32>
    %c0_15 = arith.constant 0 : index
    %c0_16 = arith.constant 0 : index
    %10 = vector.load %arg0[%c0_15, %c0_16] : memref<4x32xf32, #tpu.memory_space<vmem>>, vector<4x32xf32>
    %c0_17 = arith.constant 0 : index
    %c0_18 = arith.constant 0 : index
    %11 = vector.load %arg1[%c0_17, %c0_18] : memref<4x8xf32, #tpu.memory_space<vmem>>, vector<4x8xf32>
    %c0_19 = arith.constant 0 : index
    %c0_20 = arith.constant 0 : index
    %12 = vector.load %arg3[%c0_19, %c0_20] : memref<40x64xf32, #tpu.memory_space<vmem>>, vector<32x64xf32>
    %cst = arith.constant dense<0.000000e+00> : vector<4x64xf32>
    %13 = tpu.matmul %10, %12, %cst {dimension_numbers = #tpu.dot_dimension_numbers<[1], [0], [0], [1], [0, 0, 1, 1], [], []>} : vector<4x32xf32>, vector<32x64xf32>, vector<4x64xf32> -> vector<4x64xf32>
    %c32 = arith.constant 32 : index
    %c0_21 = arith.constant 0 : index
    %14 = vector.load %arg3[%c32, %c0_21] : memref<40x64xf32, #tpu.memory_space<vmem>>, vector<8x64xf32>
    %cst_22 = arith.constant dense<0.000000e+00> : vector<4x64xf32>
    %15 = tpu.matmul %11, %14, %cst_22 {dimension_numbers = #tpu.dot_dimension_numbers<[1], [0], [0], [1], [0, 0, 1, 1], [], []>} : vector<4x8xf32>, vector<8x64xf32>, vector<4x64xf32> -> vector<4x64xf32>
    %16 = arith.addf %13, %15 : vector<4x64xf32>
    %c0_23 = arith.constant 0 : index
    %c0_24 = arith.constant 0 : index
    %17 = vector.load %arg4[%c0_23, %c0_24] : memref<3x64xf32, #tpu.memory_space<vmem>>, vector<1x64xf32>
    %18 = vector.broadcast %17 : vector<1x64xf32> to vector<4x64xf32>
    %19 = arith.addf %16, %18 : vector<4x64xf32>
    %c1_25 = arith.constant 1 : index
    %c0_26 = arith.constant 0 : index
    %20 = vector.load %arg4[%c1_25, %c0_26] : memref<3x64xf32, #tpu.memory_space<vmem>>, vector<1x64xf32>
    %c2_27 = arith.constant 2 : index
    %c0_28 = arith.constant 0 : index
    %21 = vector.load %arg4[%c2_27, %c0_28] : memref<3x64xf32, #tpu.memory_space<vmem>>, vector<1x64xf32>
    %cst_29 = arith.constant dense<0.000000e+00> : vector<4xf32>
    %22 = vector.multi_reduction <add>, %19, %cst_29 [1] : vector<4x64xf32> to vector<4xf32>
    %23 = vector.shape_cast %22 : vector<4xf32> to vector<4x1xf32>
    %24 = arith.mulf %19, %19 : vector<4x64xf32>
    %cst_30 = arith.constant dense<0.000000e+00> : vector<4xf32>
    %25 = vector.multi_reduction <add>, %24, %cst_30 [1] : vector<4x64xf32> to vector<4xf32>
    %26 = vector.shape_cast %25 : vector<4xf32> to vector<4x1xf32>
    %cst_31 = arith.constant 1.562500e-02 : f32
    %27 = vector.broadcast %cst_31 : f32 to vector<4x1xf32>
    %28 = arith.mulf %23, %27 : vector<4x1xf32>
    %cst_32 = arith.constant 1.562500e-02 : f32
    %29 = vector.broadcast %cst_32 : f32 to vector<4x1xf32>
    %30 = arith.mulf %26, %29 : vector<4x1xf32>
    %31 = arith.mulf %28, %28 : vector<4x1xf32>
    %32 = arith.subf %30, %31 : vector<4x1xf32>
    %cst_33 = arith.constant 0.000000e+00 : f32
    %33 = vector.broadcast %cst_33 : f32 to vector<4x1xf32>
    %34 = arith.maximumf %32, %33 : vector<4x1xf32>
    %35 = vector.broadcast %28 : vector<4x1xf32> to vector<4x64xf32>
    %36 = arith.subf %19, %35 : vector<4x64xf32>
    %cst_34 = arith.constant 9.99999974E-6 : f32
    %37 = vector.broadcast %cst_34 : f32 to vector<4x1xf32>
    %38 = arith.addf %34, %37 : vector<4x1xf32>
    %39 = math.rsqrt %38 : vector<4x1xf32>
    %40 = vector.broadcast %39 : vector<4x1xf32> to vector<4x64xf32>
    %41 = arith.mulf %36, %40 : vector<4x64xf32>
    %42 = vector.broadcast %20 : vector<1x64xf32> to vector<4x64xf32>
    %43 = arith.mulf %41, %42 : vector<4x64xf32>
    %44 = vector.broadcast %21 : vector<1x64xf32> to vector<4x64xf32>
    %45 = arith.addf %43, %44 : vector<4x64xf32>
    %cst_35 = arith.constant 0.000000e+00 : f32
    %46 = vector.broadcast %cst_35 : f32 to vector<4x64xf32>
    %47 = arith.maximumf %45, %46 : vector<4x64xf32>
    %cst_36 = arith.constant dense<0.000000e+00> : vector<4x64xf32>
    %48 = tpu.matmul %47, %1, %cst_36 {dimension_numbers = #tpu.dot_dimension_numbers<[1], [0], [0], [1], [0, 0, 1, 1], [], []>} : vector<4x64xf32>, vector<64x64xf32>, vector<4x64xf32> -> vector<4x64xf32>
    %49 = vector.broadcast %2 : vector<1x64xf32> to vector<4x64xf32>
    %50 = arith.addf %48, %49 : vector<4x64xf32>
    %cst_37 = arith.constant dense<0.000000e+00> : vector<4xf32>
    %51 = vector.multi_reduction <add>, %50, %cst_37 [1] : vector<4x64xf32> to vector<4xf32>
    %52 = vector.shape_cast %51 : vector<4xf32> to vector<4x1xf32>
    %53 = arith.mulf %50, %50 : vector<4x64xf32>
    %cst_38 = arith.constant dense<0.000000e+00> : vector<4xf32>
    %54 = vector.multi_reduction <add>, %53, %cst_38 [1] : vector<4x64xf32> to vector<4xf32>
    %55 = vector.shape_cast %54 : vector<4xf32> to vector<4x1xf32>
    %cst_39 = arith.constant 1.562500e-02 : f32
    %56 = vector.broadcast %cst_39 : f32 to vector<4x1xf32>
    %57 = arith.mulf %52, %56 : vector<4x1xf32>
    %cst_40 = arith.constant 1.562500e-02 : f32
    %58 = vector.broadcast %cst_40 : f32 to vector<4x1xf32>
    %59 = arith.mulf %55, %58 : vector<4x1xf32>
    %60 = arith.mulf %57, %57 : vector<4x1xf32>
    %61 = arith.subf %59, %60 : vector<4x1xf32>
    %cst_41 = arith.constant 0.000000e+00 : f32
    %62 = vector.broadcast %cst_41 : f32 to vector<4x1xf32>
    %63 = arith.maximumf %61, %62 : vector<4x1xf32>
    %64 = vector.broadcast %57 : vector<4x1xf32> to vector<4x64xf32>
    %65 = arith.subf %50, %64 : vector<4x64xf32>
    %cst_42 = arith.constant 9.99999974E-6 : f32
    %66 = vector.broadcast %cst_42 : f32 to vector<4x1xf32>
    %67 = arith.addf %63, %66 : vector<4x1xf32>
    %68 = math.rsqrt %67 : vector<4x1xf32>
    %69 = vector.broadcast %68 : vector<4x1xf32> to vector<4x64xf32>
    %70 = arith.mulf %65, %69 : vector<4x64xf32>
    %71 = vector.broadcast %3 : vector<1x64xf32> to vector<4x64xf32>
    %72 = arith.mulf %70, %71 : vector<4x64xf32>
    %73 = vector.broadcast %4 : vector<1x64xf32> to vector<4x64xf32>
    %74 = arith.addf %72, %73 : vector<4x64xf32>
    %cst_43 = arith.constant 0.000000e+00 : f32
    %75 = vector.broadcast %cst_43 : f32 to vector<4x64xf32>
    %76 = arith.maximumf %74, %75 : vector<4x64xf32>
    %c0_44 = arith.constant 0 : index
    %c0_45 = arith.constant 0 : index
    %77 = vector.load %arg7[%c0_44, %c0_45] : memref<65x32xf32, #tpu.memory_space<vmem>>, vector<64x32xf32>
    %cst_46 = arith.constant dense<0.000000e+00> : vector<4x32xf32>
    %78 = tpu.matmul %76, %77, %cst_46 {dimension_numbers = #tpu.dot_dimension_numbers<[1], [0], [0], [1], [0, 0, 1, 1], [], []>} : vector<4x64xf32>, vector<64x32xf32>, vector<4x32xf32> -> vector<4x32xf32>
    %c64 = arith.constant 64 : index
    %c0_47 = arith.constant 0 : index
    %79 = vector.load %arg7[%c64, %c0_47] : memref<65x32xf32, #tpu.memory_space<vmem>>, vector<1x32xf32>
    %80 = vector.broadcast %79 : vector<1x32xf32> to vector<4x32xf32>
    %81 = arith.addf %78, %80 : vector<4x32xf32>
    %82 = arith.addf %81, %10 : vector<4x32xf32>
    %c0_48 = arith.constant 0 : index
    %c0_49 = arith.constant 0 : index
    %83 = vector.load %arg14[%c0_48, %c0_49] : memref<4x32xf32, #tpu.memory_space<vmem>>, vector<4x32xf32>
    tpu.vector_store %arg14[%c0_48, %c0_49], %82 {strides = array<i32>} : memref<4x32xf32, #tpu.memory_space<vmem>>, vector<4x32xf32>,
    %c0_50 = arith.constant 0 : index
    %c0_51 = arith.constant 0 : index
    %84 = vector.load %arg2[%c0_50, %c0_51] : memref<2x16xf32, #tpu.memory_space<vmem>>, vector<2x16xf32>
    %c0_52 = arith.constant 0 : index
    %c0_53 = arith.constant 0 : index
    %85 = vector.load %arg9[%c0_52, %c0_53] : memref<16x32xf32, #tpu.memory_space<vmem>>, vector<16x32xf32>
    %cst_54 = arith.constant dense<0.000000e+00> : vector<2x32xf32>
    %86 = tpu.matmul %84, %85, %cst_54 {dimension_numbers = #tpu.dot_dimension_numbers<[1], [0], [0], [1], [0, 0, 1, 1], [], []>} : vector<2x16xf32>, vector<16x32xf32>, vector<2x32xf32> -> vector<2x32xf32>
    %c0_55 = arith.constant 0 : index
    %c0_56 = arith.constant 0 : index
    %87 = vector.load %arg14[%c0_55, %c0_56] : memref<4x32xf32, #tpu.memory_space<vmem>>, vector<2x32xf32>
    %c0_57 = arith.constant 0 : index
    %c0_58 = arith.constant 0 : index
    %c0_59 = arith.constant 0 : index
    %88 = vector.load %arg8[%c0_57, %c0_58, %c0_59] : memref<2x32x32xf32, #tpu.memory_space<vmem>>, vector<1x32x32xf32>
    %89 = vector.shape_cast %88 : vector<1x32x32xf32> to vector<32x32xf32>
    %cst_60 = arith.constant dense<0.000000e+00> : vector<2x32xf32>
    %90 = tpu.matmul %87, %89, %cst_60 {dimension_numbers = #tpu.dot_dimension_numbers<[1], [0], [0], [1], [0, 0, 1, 1], [], []>} : vector<2x32xf32>, vector<32x32xf32>, vector<2x32xf32> -> vector<2x32xf32>
    %91 = arith.addf %86, %90 : vector<2x32xf32>
    %c2_61 = arith.constant 2 : index
    %c0_62 = arith.constant 0 : index
    %92 = vector.load %arg14[%c2_61, %c0_62] : memref<4x32xf32, #tpu.memory_space<vmem>>, vector<2x32xf32>
    %c1_63 = arith.constant 1 : index
    %c0_64 = arith.constant 0 : index
    %c0_65 = arith.constant 0 : index
    %93 = vector.load %arg8[%c1_63, %c0_64, %c0_65] : memref<2x32x32xf32, #tpu.memory_space<vmem>>, vector<1x32x32xf32>
    %94 = vector.shape_cast %93 : vector<1x32x32xf32> to vector<32x32xf32>
    %cst_66 = arith.constant dense<0.000000e+00> : vector<2x32xf32>
    %95 = tpu.matmul %92, %94, %cst_66 {dimension_numbers = #tpu.dot_dimension_numbers<[1], [0], [0], [1], [0, 0, 1, 1], [], []>} : vector<2x32xf32>, vector<32x32xf32>, vector<2x32xf32> -> vector<2x32xf32>
    %96 = arith.addf %91, %95 : vector<2x32xf32>
    %c0_67 = arith.constant 0 : index
    %c0_68 = arith.constant 0 : index
    %97 = vector.load %arg10[%c0_67, %c0_68] : memref<3x32xf32, #tpu.memory_space<vmem>>, vector<1x32xf32>
    %98 = vector.broadcast %97 : vector<1x32xf32> to vector<2x32xf32>
    %99 = arith.addf %96, %98 : vector<2x32xf32>
    %c1_69 = arith.constant 1 : index
    %c0_70 = arith.constant 0 : index
    %100 = vector.load %arg10[%c1_69, %c0_70] : memref<3x32xf32, #tpu.memory_space<vmem>>, vector<1x32xf32>
    %c2_71 = arith.constant 2 : index
    %c0_72 = arith.constant 0 : index
    %101 = vector.load %arg10[%c2_71, %c0_72] : memref<3x32xf32, #tpu.memory_space<vmem>>, vector<1x32xf32>
    %cst_73 = arith.constant dense<0.000000e+00> : vector<2xf32>
    %102 = vector.multi_reduction <add>, %99, %cst_73 [1] : vector<2x32xf32> to vector<2xf32>
    %103 = vector.shape_cast %102 : vector<2xf32> to vector<2x1xf32>
    %104 = arith.mulf %99, %99 : vector<2x32xf32>
    %cst_74 = arith.constant dense<0.000000e+00> : vector<2xf32>
    %105 = vector.multi_reduction <add>, %104, %cst_74 [1] : vector<2x32xf32> to vector<2xf32>
    %106 = vector.shape_cast %105 : vector<2xf32> to vector<2x1xf32>
    %cst_75 = arith.constant 3.125000e-02 : f32
    %107 = vector.broadcast %cst_75 : f32 to vector<2x1xf32>
    %108 = arith.mulf %103, %107 : vector<2x1xf32>
    %cst_76 = arith.constant 3.125000e-02 : f32
    %109 = vector.broadcast %cst_76 : f32 to vector<2x1xf32>
    %110 = arith.mulf %106, %109 : vector<2x1xf32>
    %111 = arith.mulf %108, %108 : vector<2x1xf32>
    %112 = arith.subf %110, %111 : vector<2x1xf32>
    %cst_77 = arith.constant 0.000000e+00 : f32
    %113 = vector.broadcast %cst_77 : f32 to vector<2x1xf32>
    %114 = arith.maximumf %112, %113 : vector<2x1xf32>
    %115 = vector.broadcast %108 : vector<2x1xf32> to vector<2x32xf32>
    %116 = arith.subf %99, %115 : vector<2x32xf32>
    %cst_78 = arith.constant 9.99999974E-6 : f32
    %117 = vector.broadcast %cst_78 : f32 to vector<2x1xf32>
    %118 = arith.addf %114, %117 : vector<2x1xf32>
    %119 = math.rsqrt %118 : vector<2x1xf32>
    %120 = vector.broadcast %119 : vector<2x1xf32> to vector<2x32xf32>
    %121 = arith.mulf %116, %120 : vector<2x32xf32>
    %122 = vector.broadcast %100 : vector<1x32xf32> to vector<2x32xf32>
    %123 = arith.mulf %121, %122 : vector<2x32xf32>
    %124 = vector.broadcast %101 : vector<1x32xf32> to vector<2x32xf32>
    %125 = arith.addf %123, %124 : vector<2x32xf32>
    %cst_79 = arith.constant 0.000000e+00 : f32
    %126 = vector.broadcast %cst_79 : f32 to vector<2x32xf32>
    %127 = arith.maximumf %125, %126 : vector<2x32xf32>
    %cst_80 = arith.constant dense<0.000000e+00> : vector<2x32xf32>
    %128 = tpu.matmul %127, %6, %cst_80 {dimension_numbers = #tpu.dot_dimension_numbers<[1], [0], [0], [1], [0, 0, 1, 1], [], []>} : vector<2x32xf32>, vector<32x32xf32>, vector<2x32xf32> -> vector<2x32xf32>
    %129 = vector.broadcast %7 : vector<1x32xf32> to vector<2x32xf32>
    %130 = arith.addf %128, %129 : vector<2x32xf32>
    %cst_81 = arith.constant dense<0.000000e+00> : vector<2xf32>
    %131 = vector.multi_reduction <add>, %130, %cst_81 [1] : vector<2x32xf32> to vector<2xf32>
    %132 = vector.shape_cast %131 : vector<2xf32> to vector<2x1xf32>
    %133 = arith.mulf %130, %130 : vector<2x32xf32>
    %cst_82 = arith.constant dense<0.000000e+00> : vector<2xf32>
    %134 = vector.multi_reduction <add>, %133, %cst_82 [1] : vector<2x32xf32> to vector<2xf32>
    %135 = vector.shape_cast %134 : vector<2xf32> to vector<2x1xf32>
    %cst_83 = arith.constant 3.125000e-02 : f32
    %136 = vector.broadcast %cst_83 : f32 to vector<2x1xf32>
    %137 = arith.mulf %132, %136 : vector<2x1xf32>
    %cst_84 = arith.constant 3.125000e-02 : f32
    %138 = vector.broadcast %cst_84 : f32 to vector<2x1xf32>
    %139 = arith.mulf %135, %138 : vector<2x1xf32>
    %140 = arith.mulf %137, %137 : vector<2x1xf32>
    %141 = arith.subf %139, %140 : vector<2x1xf32>
    %cst_85 = arith.constant 0.000000e+00 : f32
    %142 = vector.broadcast %cst_85 : f32 to vector<2x1xf32>
    %143 = arith.maximumf %141, %142 : vector<2x1xf32>
    %144 = vector.broadcast %137 : vector<2x1xf32> to vector<2x32xf32>
    %145 = arith.subf %130, %144 : vector<2x32xf32>
    %cst_86 = arith.constant 9.99999974E-6 : f32
    %146 = vector.broadcast %cst_86 : f32 to vector<2x1xf32>
    %147 = arith.addf %143, %146 : vector<2x1xf32>
    %148 = math.rsqrt %147 : vector<2x1xf32>
    %149 = vector.broadcast %148 : vector<2x1xf32> to vector<2x32xf32>
    %150 = arith.mulf %145, %149 : vector<2x32xf32>
    %151 = vector.broadcast %8 : vector<1x32xf32> to vector<2x32xf32>
    %152 = arith.mulf %150, %151 : vector<2x32xf32>
    %153 = vector.broadcast %9 : vector<1x32xf32> to vector<2x32xf32>
    %154 = arith.addf %152, %153 : vector<2x32xf32>
    %cst_87 = arith.constant 0.000000e+00 : f32
    %155 = vector.broadcast %cst_87 : f32 to vector<2x32xf32>
    %156 = arith.maximumf %154, %155 : vector<2x32xf32>
    %c0_88 = arith.constant 0 : index
    %c0_89 = arith.constant 0 : index
    %157 = vector.load %arg13[%c0_88, %c0_89] : memref<2x32xf32, #tpu.memory_space<vmem>>, vector<1x32xf32>
    %158 = vector.broadcast %157 : vector<1x32xf32> to vector<2x32xf32>
    %159 = arith.mulf %156, %158 : vector<2x32xf32>
    %cst_90 = arith.constant dense<0.000000e+00> : vector<2xf32>
    %160 = vector.multi_reduction <add>, %159, %cst_90 [1] : vector<2x32xf32> to vector<2xf32>
    %161 = vector.shape_cast %160 : vector<2xf32> to vector<2x1xf32>
    %c1_91 = arith.constant 1 : index
    %c0_92 = arith.constant 0 : index
    %162 = vector.load %arg13[%c1_91, %c0_92] : memref<2x32xf32, #tpu.memory_space<vmem>>, vector<1x1xf32>
    %163 = vector.broadcast %162 : vector<1x1xf32> to vector<2x1xf32>
    %164 = arith.addf %161, %163 : vector<2x1xf32>
    %c0_93 = arith.constant 0 : index
    %c0_94 = arith.constant 0 : index
    %165 = vector.load %arg15[%c0_93, %c0_94] : memref<2x1xf32, #tpu.memory_space<vmem>>, vector<2x1xf32>
    tpu.vector_store %arg15[%c0_93, %c0_94], %164 {strides = array<i32>} : memref<2x1xf32, #tpu.memory_space<vmem>>, vector<2x1xf32>,
    return
  }
}

</mosaic_0001>

<bundles_post_ra>
// kernel: dynamics_forward.1
= control target key start
LH: loop header
LB: loop body
LE: loop exit
PB: predicated region body
PF: predicated region fallthrough
CT: control target
= control target key end

     0   :  { %21 = vsyncpa [#allocation3], 0  ;;  %s911_s0 = inlined_call_operand.vmem [shape: f32[4,32], index: 0, kind: input, shape index: {}]   ;;  %s912_s1 = inlined_call_operand.vmem [shape: f32[4,8], index: 1, kind: input, shape index: {}]   ;;  %s913_s2 = inlined_call_operand.vmem [shape: f32[2,16], index: 2, kind: input, shape index: {}]   ;;  %s914_s3 = inlined_call_operand.vmem [shape: f32[40,64], index: 3, kind: input, shape index: {}]   ;;  %s915_s4 = inlined_call_operand.vmem [shape: f32[3,64], index: 4, kind: input, shape index: {}]   ;;  %s916_s5 = inlined_call_operand.vmem [shape: f32[1,64,64], index: 5, kind: input, shape index: {}]   ;;  %s917_s6 = inlined_call_operand.hbm [shape: f32[3,64], index: 6, kind: input, shape index: {}]   ;;  %s918_s7 = inlined_call_operand.vmem [shape: f32[65,32], index: 7, kind: input, shape index: {}]   ;;  %s919_s8 = inlined_call_operand.hbm [shape: f32[2,32,32], index: 8, kind: input, shape index: {}]   ;;  %s920_s9 = inlined_call_operand.vmem [shape: f32[16,32], index: 9, kind: input, shape index: {}]   ;;  %s921_s10 = inlined_call_operand.hbm [shape: f32[3,32], index: 10, kind: input, shape index: {}]   ;;  %s922_s11 = inlined_call_operand.hbm [shape: f32[1,32,32], index: 11, kind: input, shape index: {}]   ;;  %s923_s12 = inlined_call_operand.hbm [shape: f32[3,32], index: 12, kind: input, shape index: {}]   ;;  %s924_s13 = inlined_call_operand.vmem [shape: f32[2,32], index: 13, kind: input, shape index: {}]   ;;  %s925_s14 = inlined_call_operand.vmem [shape: f32[4,32], index: 14, kind: output, shape index: {0}]   ;;  %s926_s15 = inlined_call_operand.vmem [shape: f32[2,1], index: 15, kind: output, shape index: {1}]  }
   0x1   :  { %22 = vsyncpa [#allocation5], 0  ;;  %s53_s20 = sshll.u32 %s919_s8, 4  ;;  %s54_s20 = int_to_ptr.hbm [resolvable:$true] %s53_s20 }
   0x2   :  { %23 = vsyncpa [#allocation8], 0  ;;  %s682_s21 = smov [#allocation4]   ;;  %s79_s25 = sshll.u32 %s922_s11, 4  ;;  %s80_s25 = int_to_ptr.hbm [resolvable:$true] %s79_s25 }
   0x3   :  { %s55_s22 = sshll.u32 %s682_s21, 4  ;;  %s683_s26 = smov 128   ;;  %s56_s22 = int_to_ptr.vmem [resolvable:$true] %s55_s22 }
   0x4   :  { %s684_s27 = smov 8   ;;  %s685_s28 = smov [#allocation7]  }
   0x5   :  { %61 = dma.hbm_to_vmem [thread:$0]  %s54_s20, 1024, %s56_s22, [#allocation5], %s683_s26, %s683_s26, %s684_s27  }
   0x6   :  { %s81_s29 = sshll.u32 %s685_s28, 4  ;;  %s41_s17 = sshll.u32 %s917_s6, 4  ;;  %s82_s29 = int_to_ptr.vmem [resolvable:$true] %s81_s29  ;;  %s42_s17 = int_to_ptr.hbm [resolvable:$true] %s41_s17 }
   0x7   :  { %87 = dma.hbm_to_vmem [thread:$0]  %s80_s25, 512, %s82_s29, [#allocation8], %s683_s26, %s683_s26, %s684_s27  }
   0x8   :  { %s69_s19 = sshll.u32 %s921_s10, 4  ;;  %s686_s21 = smov [#allocation2]   ;;  %s70_s19 = int_to_ptr.hbm [resolvable:$true] %s69_s19 }
   0x9   :  { %s43_s23 = sshll.u32 %s686_s21, 4  ;;  %s687_s11 = smov [#allocation6]   ;;  %s44_s23 = int_to_ptr.vmem [resolvable:$true] %s43_s23 }
   0xa   :  { %46 = dma.hbm_to_vmem [thread:$0]  %s42_s17, 64, %s44_s23, [#allocation3]  }
   0xb   :  { %s71_s20 = sshll.u32 %s687_s11, 4  ;;  %s93_s28 = sshll.u32 %s923_s12, 4  ;;  %s72_s20 = int_to_ptr.vmem [resolvable:$true] %s71_s20  ;;  %s94_s28 = int_to_ptr.hbm [resolvable:$true] %s93_s28 }
   0xc   :  { %74 = dma.hbm_to_vmem [thread:$0]  %s70_s19, 64, %s72_s20, [#allocation5]  }
   0xd   :  { %s688_s6 = smov [#allocation9]  }
   0xe   :  { %s95_s25 = sshll.u32 %s688_s6, 4  ;;  %s96_s25 = int_to_ptr.vmem [resolvable:$true] %s95_s25 }
   0xf   :  { %98 = dma.hbm_to_vmem [thread:$0]  %s94_s28, 64, %s96_s25, [#allocation8]  }
  0x10   :  { %676 = dma.done.wait [#allocation3], 64  }
  0x11   :  { %677 = vsyncadd [#allocation3], 4294967232 }
  0x12   :  { %678 = dma.done.wait [#allocation5], 1088  }
  0x13   :  { %679 = vsyncadd [#allocation5], 4294966208 }
  0x14   :  { %680 = dma.done.wait [#allocation8], 576  }
  0x15   :  { %681 = vsyncadd [#allocation8], 4294966720  ;;  %v144_v0 = vld [vmem:[%s914_s3 + $0x18] sm:$0xff]  ;;  %v143_v1 = vld [vmem:[%s914_s3 + $0x10] sm:$0xff]  ;;  %vm146_vm0 = vcmask 64512   ;;  %vm170_vm1 = vcmask 261120  }
  0x16   :  { %186 = vmatpush.msra.mxu1 %v144_v0  ;;  %v142_v2 = vld [vmem:[%s914_s3 + $0x8] sm:$0xff]  ;;  %v145_v3 = vld [vmem:[%s914_s3 + $0x20] sm:$0xff]  ;;  %vm199_vm2 = vcmask 519168   ;;  %v128_v15 = vld [vmem:[%s916_s5 + $0x38] sm:$0xff]  ;;  %vm231_vm6 = vcmask 523264   ;;  %vm352_vm10 = vcmask 130048  }
  0x17   :  { %v140_v4 = vld [vmem:[%s912_s1] sm:$0xf]  ;;  %165 = vmatpush.msra.mxu0 %v145_v3  ;;  %243 = vmatpush.msra.mxu2 %v128_v15  ;;  %v127_v16 = vld [vmem:[%s916_s5 + $0x30] sm:$0xff]  ;;  %v126_v17 = vld [vmem:[%s916_s5 + $0x28] sm:$0xff]  ;;  %vm319_vm11 = vcmask 257024   ;;  %vm411_vm12 = vcmask 254976  }
  0x18   :  { %v141_v5 = vld [vmem:[%s914_s3] sm:$0xff]  ;;  %187 = vmatpush.msra.mxu1 %v143_v1  ;;  %518 = vmatmul.msk.f32.vlgmr.msra.gmra.mxu0 %vm146_vm0, %v140_v4  ;;  %v124_v20 = vld [vmem:[%s916_s5 + $0x18] sm:$0xff]  ;;  %v123_v21 = vld [vmem:[%s916_s5 + $0x10] sm:$0xff] }
  0x19   :  { %v805_v6 = vld [vmem:[%s911_s0] sm:$0xf]  ;;  %244 = vmatpush.msra.mxu2 %v127_v16  ;;  %v122_v23 = vld [vmem:[%s916_s5 + $0x8] sm:$0xff]  ;;  %v292_v51 = vld [vmem:[%s918_s7 + $0x38] sm:$0xff] }
  0x1a   :  { %188 = vmatpush.msra.mxu1 %v142_v2  ;;  %v533_v8 = vld [vmem:[%s915_s4] ss:$0 sm:$0xff]  ;;  %v534_v38 = vld [vmem:[%s915_s4 + $0x1] ss:$0 sm:$0xff]  ;;  %v535_v41 = vld [vmem:[%s915_s4 + $0x2] ss:$0 sm:$0xff]  ;;  %306 = vmatpush.msra.mxu3 %v292_v51 }
  0x1b   :  { %245 = vmatpush.msra.mxu2 %v126_v17  ;;  %v125_v19 = vld [vmem:[%s916_s5 + $0x20] sm:$0xff]  ;;  %v291_v52 = vld [vmem:[%s918_s7 + $0x30] sm:$0xff]  ;;  %v290_v53 = vld [vmem:[%s918_s7 + $0x28] sm:$0xff] }
  0x1c   :  { %189 = vmatpush.msra.mxu1 %v141_v5  ;;  %v121_v24 = vld [vmem:[%s916_s5] sm:$0xff]  ;;  %307 = vmatpush.msra.mxu3 %v291_v52  ;;  %v288_v56 = vld [vmem:[%s918_s7 + $0x18] sm:$0xff]  ;;  %v287_v57 = vld [vmem:[%s918_s7 + $0x10] sm:$0xff] }
  0x1d   :  { %519 = vmatmul.msk.f32.vlgmr.msra.gmra.mxu1 %vm170_vm1, %v805_v6  ;;  %246 = vmatpush.msra.mxu2 %v125_v19  ;;  %v536_v45 = vld [vmem:[#allocation2] ss:$0 sm:$0xff]  ;;  %v286_v59 = vld [vmem:[%s918_s7 + $0x8] sm:$0xff]  ;;  %v327_v19 = vld [vmem:[#allocation4 + $0x10] sm:$0xff] }
  0x1e   :  { %308 = vmatpush.msra.mxu3 %v290_v53  ;;  %v289_v55 = vld [vmem:[%s918_s7 + $0x20] sm:$0xff] }
  0x1f   :  { %247 = vmatpush.msra.mxu2 %v124_v20  ;;  %v285_v60 = vld [vmem:[%s918_s7] sm:$0xff]  ;;  %v323_v20 = vld [vmem:[%s920_s9 + $0x8] sm:$0xff] }
  0x20   :  { %309 = vmatpush.msra.mxu3 %v289_v55  ;;  %370 = vmatpush.msrb.mxu1 %v323_v20 }
  0x21   :  { %248 = vmatpush.msra.mxu2 %v123_v21  ;;  %v322_v21 = vld [vmem:[%s920_s9] sm:$0xff] }
  0x22   :  { %310 = vmatpush.msra.mxu3 %v288_v56  ;;  %371 = vmatpush.msrb.mxu1 %v322_v21 }
  0x23   :  { %249 = vmatpush.msra.mxu2 %v122_v23  ;;  %v325_v23 = vld [vmem:[#allocation4] sm:$0xff] }
  0x24   :  { %311 = vmatpush.msra.mxu3 %v287_v57 }
  0x25   :  { %250 = vmatpush.msra.mxu2 %v121_v24  ;;  %v321_v24 = vld [vmem:[%s913_s2] sm:$0x3] }
  0x26   :  { %312 = vmatpush.msra.mxu3 %v286_v59  ;;  %523 = vmatmul.msk.f32.vlgmr.msrb.gmra.mxu1 %vm352_vm10, %v321_v24 }
  0x28   :  { %313 = vmatpush.msra.mxu3 %v285_v60 }
  0x95   :  { %v167_v7 = vpop.f32.mrf.mxu0 }
  0x9a   :  { %v191_v9 = vpop.f32.mrf.mxu1 }
  0x9b   :  { %v192_v10 = vadd.f32 %v191_v9, %v167_v7 }
  0x9d   :  { %v196_v11 = vadd.f32 %v533_v8, %v192_v10 }
  0x9f   :  { %v200_v12 = vsel %vm199_vm2, %v196_v11, 0.0  ;;  %v203_v13 = vmul.f32 %v196_v11, %v196_v11 }
  0xa0   :  { %201 = vadd.xlane.f32.xlu0 %v200_v12 }
  0xa1   :  { %v204_v14 = vsel %vm199_vm2, %v203_v13, 0.0 }
  0xa8   :  { %205 = vadd.xlane.f32.xlu0 %v204_v14  ;;  %v538_v14 = vld [vmem:[#allocation2 + $0x2] ss:$0 sm:$0xff] }
 0x113   :  { %v202_v18 = vpop.xlane.xlu0 %201 }
 0x114   :  { %v207_v22 = vmul.f32 0.015625, %v202_v18  ;;  %v328_v18 = vld [vmem:[#allocation4 + $0x18] sm:$0xff] }
 0x115   :  { %344 = vmatpush.msrb.mxu0 %v328_v18 }
 0x116   :  { %v209_v26 = vmul.f32 %v207_v22, %v207_v22  ;;  %v212_v37 = vsub.f32 %v196_v11, %v207_v22  ;;  %v537_v11 = vld [vmem:[#allocation2 + $0x1] ss:$0 sm:$0xff]  ;;  %v326_v22 = vld [vmem:[#allocation4 + $0x8] sm:$0xff] }
 0x117   :  { %345 = vmatpush.msrb.mxu0 %v327_v19 }
 0x119   :  { %346 = vmatpush.msrb.mxu0 %v326_v22 }
 0x11b   :  { %v206_v25 = vpop.xlane.xlu0 %205  ;;  %347 = vmatpush.msrb.mxu0 %v325_v23 }
 0x11c   :  { %v208_v27 = vmul.f32 0.015625, %v206_v25  ;;  %v381_v25 = vld [vmem:[#allocation4 + $0x38] sm:$0xff] }
 0x11d   :  { %397 = vmatpush.msra.mxu0 %v381_v25 }
 0x11e   :  { %v210_v28 = vsub.f32 %v208_v27, %v209_v26  ;;  %v380_v26 = vld [vmem:[#allocation4 + $0x30] sm:$0xff]  ;;  %v379_v27 = vld [vmem:[#allocation4 + $0x28] sm:$0xff] }
 0x11f   :  { %398 = vmatpush.msra.mxu0 %v380_v26 }
 0x120   :  { %v211_v29 = vmax.f32 %v210_v28, 0.0  ;;  %v378_v28 = vld [vmem:[#allocation4 + $0x20] sm:$0xff] }
 0x121   :  { %399 = vmatpush.msra.mxu0 %v379_v27 }
 0x122   :  { %v213_v30 = vadd.f32 1e-05, %v211_v29  ;;  %v539_v29 = vld [vmem:[%s918_s7 + $0x40] ss:$0 sm:$0xff] }
 0x123   :  { %400 = vmatpush.msra.mxu0 %v378_v28  ;;  %v544_v28 = vld [vmem:[#allocation9 + $0x1] ss:$0 sm:$0xff] }
 0x124   :  { %548 = vrsqrt.f32 %v213_v30  ;;  %vm220_vm4 = vweird.f32 %v213_v30 }
 0x12a   :  { %v549_v31 = vpop.eup %548 }
 0x12b   :  { %v215_v32 = vmul.f32 %v549_v31, %v213_v30  ;;  %vm221_vm3 = vweird.f32 %v549_v31 }
 0x12c   :  { %vm222_vm5 = vmor %vm220_vm4, %vm221_vm3  ;;  %vm505_vm3 = vcmask 1024  }
 0x12d   :  { %v216_v33 = vmul.f32 %v549_v31, %v215_v32 }
 0x12f   :  { %v217_v34 = vmul.f32 0.5, %v216_v33 }
 0x131   :  { %v218_v35 = vsub.f32 1.5, %v217_v34 }
 0x133   :  { %v219_v36 = vmul.f32 %v549_v31, %v218_v35 }
 0x135   :  { %v223_v39 = vsel %vm222_vm5, %v549_v31, %v219_v36  ;;  %v373_v36 = vpop.f32.mrf.mxu1 }
 0x136   :  { %v224_v40 = vmul.f32 %v223_v39, %v212_v37 }
 0x138   :  { %v226_v42 = vmul.f32 %v534_v38, %v224_v40 }
 0x13a   :  { %v228_v43 = vadd.f32 %v535_v41, %v226_v42 }
 0x13c   :  { %v229_v44 = vmax.f32 %v228_v43, 0.0 }
 0x13e   :  { %520 = vmatmul.msk.f32.vlgmr.msra.gmra.mxu2 %vm231_vm6, %v229_v44 }
 0x1c1   :  { %v252_v46 = vpop.f32.mrf.mxu2 }
 0x1c2   :  { %v253_v47 = vadd.f32 %v536_v45, %v252_v46  ;;  %v135_v45 = vld [vmem:[#allocation7 + $0x18] sm:$0xff] }
 0x1c3   :  { %458 = vmatpush.msra.mxu1 %v135_v45 }
 0x1c4   :  { %v255_v48 = vsel %vm199_vm2, %v253_v47, 0.0  ;;  %v258_v49 = vmul.f32 %v253_v47, %v253_v47 }
 0x1c5   :  { %256 = vadd.xlane.f32.xlu1 %v255_v48  ;;  %v133_v48 = vld [vmem:[#allocation7 + $0x8] sm:$0xff] }
 0x1c6   :  { %v259_v50 = vsel %vm199_vm2, %v258_v49, 0.0  ;;  %v132_v49 = vld [vmem:[#allocation7] sm:$0xff] }
 0x1cd   :  { %260 = vadd.xlane.f32.xlu1 %v259_v50 }
 0x238   :  { %v257_v54 = vpop.xlane.xlu1 %256 }
 0x239   :  { %v262_v58 = vmul.f32 0.015625, %v257_v54 }
 0x23b   :  { %v264_v62 = vmul.f32 %v262_v58, %v262_v58  ;;  %v267_v10 = vsub.f32 %v253_v47, %v262_v58  ;;  %v134_v47 = vld [vmem:[#allocation7 + $0x10] sm:$0xff] }
 0x23c   :  { %459 = vmatpush.msra.mxu1 %v134_v47 }
 0x23e   :  { %460 = vmatpush.msra.mxu1 %v133_v48 }
 0x240   :  { %v261_v61 = vpop.xlane.xlu1 %260  ;;  %461 = vmatpush.msra.mxu1 %v132_v49 }
 0x241   :  { %v263_v63 = vmul.f32 0.015625, %v261_v61 }
 0x243   :  { %v265_v0 = vsub.f32 %v263_v63, %v264_v62  ;;  %v541_v63 = vld [vmem:[#allocation6 + $0x1] ss:$0 sm:$0xff] }
 0x245   :  { %v266_v1 = vmax.f32 %v265_v0, 0.0 }
 0x247   :  { %v268_v2 = vadd.f32 1e-05, %v266_v1 }
 0x249   :  { %550 = vrsqrt.f32 %v268_v2  ;;  %vm275_vm8 = vweird.f32 %v268_v2 }
 0x24f   :  { %v551_v3 = vpop.eup %550 }
 0x250   :  { %v270_v4 = vmul.f32 %v551_v3, %v268_v2  ;;  %vm276_vm7 = vweird.f32 %v551_v3  ;;  %v542_v2 = vld [vmem:[#allocation6 + $0x2] ss:$0 sm:$0xff] }
 0x251   :  { %vm277_vm9 = vmor %vm275_vm8, %vm276_vm7 }
 0x252   :  { %v271_v5 = vmul.f32 %v551_v3, %v270_v4 }
 0x254   :  { %v272_v7 = vmul.f32 0.5, %v271_v5 }
 0x256   :  { %v273_v8 = vsub.f32 1.5, %v272_v7  ;;  %v543_v7 = vld [vmem:[#allocation9] ss:$0 sm:$0xff] }
 0x258   :  { %v274_v9 = vmul.f32 %v551_v3, %v273_v8 }
 0x25a   :  { %v278_v12 = vsel %vm277_vm9, %v551_v3, %v274_v9 }
 0x25b   :  { %v279_v13 = vmul.f32 %v278_v12, %v267_v10 }
 0x25d   :  { %v281_v15 = vmul.f32 %v537_v11, %v279_v13 }
 0x25f   :  { %v283_v16 = vadd.f32 %v538_v14, %v281_v15 }
 0x261   :  { %v284_v17 = vmax.f32 %v283_v16, 0.0 }
 0x263   :  { %521 = vmatmul.msk.f32.vlgmr.msra.gmra.mxu3 %vm231_vm6, %v284_v17 }
 0x2e6   :  { %v315_v30 = vpop.f32.mrf.mxu3 }
 0x2e7   :  { %v316_v31 = vadd.f32 %v539_v29, %v315_v30 }
 0x2e9   :  { %v318_v32 = vadd.f32 %v316_v31, %v805_v6  ;;  %v540_v6 = vld [vmem:[#allocation6] ss:$0 sm:$0xff]  ;;  %v545_v31 = vld [vmem:[#allocation9 + $0x2] ss:$0 sm:$0xff] }
 0x2eb   :  { %320 = vst.msk [vmem:[%s925_s14] sm:$0xf] %vm319_vm11, %v318_v32 }
 0x2f2   :  { %v324_v33 = vld [vmem:[%s925_s14] sm:$0x3]  ;;  %v376_v34 = vld [vmem:[%s925_s14 + $0x2] sm:$0x3] }
 0x2f3   :  { %522 = vmatmul.msk.f32.vlgmr.msrb.gmra.mxu0 %vm170_vm1, %v324_v33 }
 0x2fb   :  { %524 = vmatmul.msk.f32.vlgmr.msra.gmra.mxu0 %vm170_vm1, %v376_v34  ;;  %v546_v34 = vld [vmem:[%s924_s13] ss:$0 sm:$0xff] }
 0x370   :  { %v349_v35 = vpop.f32.mrf.mxu0 }
 0x371   :  { %v374_v37 = vadd.f32 %v373_v36, %v349_v35 }
 0x378   :  { %v402_v38 = vpop.f32.mrf.mxu0 }
 0x379   :  { %v405_v39 = vadd.f32 %v402_v38, %v374_v37 }
 0x37b   :  { %v408_v40 = vadd.f32 %v540_v6, %v405_v39  ;;  %v547_v6 = vld [vmem:[%s924_s13 + $0x1] ss:$0 sm:$0xff] }
 0x37d   :  { %v412_v41 = vsel %vm411_vm12, %v408_v40, 0.0  ;;  %v415_v42 = vmul.f32 %v408_v40, %v408_v40 }
 0x37e   :  { %413 = vadd.xlane.f32.xlu2 %v412_v41 }
 0x37f   :  { %v416_v43 = vsel %vm411_vm12, %v415_v42, 0.0 }
 0x386   :  { %417 = vadd.xlane.f32.xlu2 %v416_v43 }
 0x3f1   :  { %v414_v44 = vpop.xlane.xlu2 %413 }
 0x3f2   :  { %v419_v46 = vmul.f32 0.03125, %v414_v44 }
 0x3f4   :  { %v421_v51 = vmul.f32 %v419_v46, %v419_v46  ;;  %v424_v62 = vsub.f32 %v408_v40, %v419_v46 }
 0x3f9   :  { %v418_v50 = vpop.xlane.xlu2 %417 }
 0x3fa   :  { %v420_v52 = vmul.f32 0.03125, %v418_v50 }
 0x3fc   :  { %v422_v53 = vsub.f32 %v420_v52, %v421_v51 }
 0x3fe   :  { %v423_v54 = vmax.f32 %v422_v53, 0.0 }
 0x400   :  { %v425_v55 = vadd.f32 1e-05, %v423_v54 }
 0x402   :  { %552 = vrsqrt.f32 %v425_v55  ;;  %vm432_vm14 = vweird.f32 %v425_v55 }
 0x408   :  { %v553_v56 = vpop.eup %552 }
 0x409   :  { %v427_v57 = vmul.f32 %v553_v56, %v425_v55  ;;  %vm433_vm13 = vweird.f32 %v553_v56 }
 0x40a   :  { %vm434_vm15 = vmor %vm432_vm14, %vm433_vm13 }
 0x40b   :  { %v428_v58 = vmul.f32 %v553_v56, %v427_v57 }
 0x40d   :  { %v429_v59 = vmul.f32 0.5, %v428_v58 }
 0x40f   :  { %v430_v60 = vsub.f32 1.5, %v429_v59 }
 0x411   :  { %v431_v61 = vmul.f32 %v553_v56, %v430_v60 }
 0x413   :  { %v435_v0 = vsel %vm434_vm15, %v553_v56, %v431_v61 }
 0x414   :  { %v436_v1 = vmul.f32 %v435_v0, %v424_v62 }
 0x416   :  { %v438_v3 = vmul.f32 %v541_v63, %v436_v1 }
 0x418   :  { %v440_v4 = vadd.f32 %v542_v2, %v438_v3 }
 0x41a   :  { %v441_v5 = vmax.f32 %v440_v4, 0.0 }
 0x41c   :  { %525 = vmatmul.msk.f32.vlgmr.msra.gmra.mxu1 %vm170_vm1, %v441_v5 }
 0x499   :  { %v463_v8 = vpop.f32.mrf.mxu1 }
 0x49a   :  { %v464_v9 = vadd.f32 %v543_v7, %v463_v8 }
 0x49c   :  { %v466_v10 = vsel %vm411_vm12, %v464_v9, 0.0  ;;  %v469_v11 = vmul.f32 %v464_v9, %v464_v9 }
 0x49d   :  { %467 = vadd.xlane.f32.xlu0 %v466_v10 }
 0x49e   :  { %v470_v12 = vsel %vm411_vm12, %v469_v11, 0.0 }
 0x49f   :  { %471 = vadd.xlane.f32.xlu1 %v470_v12 }
 0x510   :  { %v468_v13 = vpop.xlane.xlu0 %467 }
 0x511   :  { %v473_v14 = vmul.f32 0.03125, %v468_v13 }
 0x512   :  { %v472_v15 = vpop.xlane.xlu1 %471 }
 0x513   :  { %v475_v16 = vmul.f32 %v473_v14, %v473_v14  ;;  %v474_v17 = vmul.f32 0.03125, %v472_v15  ;;  %v478_v27 = vsub.f32 %v464_v9, %v473_v14 }
 0x515   :  { %v476_v18 = vsub.f32 %v474_v17, %v475_v16 }
 0x517   :  { %v477_v19 = vmax.f32 %v476_v18, 0.0 }
 0x519   :  { %v479_v20 = vadd.f32 1e-05, %v477_v19 }
 0x51b   :  { %554 = vrsqrt.f32 %v479_v20  ;;  %vm486_vm1 = vweird.f32 %v479_v20 }
 0x521   :  { %v555_v21 = vpop.eup %554 }
 0x522   :  { %v481_v22 = vmul.f32 %v555_v21, %v479_v20  ;;  %vm487_vm0 = vweird.f32 %v555_v21 }
 0x523   :  { %vm488_vm2 = vmor %vm486_vm1, %vm487_vm0 }
 0x524   :  { %v482_v23 = vmul.f32 %v555_v21, %v481_v22 }
 0x526   :  { %v483_v24 = vmul.f32 0.5, %v482_v23 }
 0x528   :  { %v484_v25 = vsub.f32 1.5, %v483_v24 }
 0x52a   :  { %v485_v26 = vmul.f32 %v555_v21, %v484_v25 }
 0x52c   :  { %v489_v29 = vsel %vm488_vm2, %v555_v21, %v485_v26 }
 0x52d   :  { %v490_v30 = vmul.f32 %v489_v29, %v478_v27 }
 0x52f   :  { %v492_v32 = vmul.f32 %v544_v28, %v490_v30 }
 0x531   :  { %v494_v33 = vadd.f32 %v545_v31, %v492_v32 }
 0x533   :  { %v495_v35 = vmax.f32 %v494_v33, 0.0 }
 0x535   :  { %v498_v36 = vmul.f32 %v546_v34, %v495_v35 }
 0x537   :  { %v499_v37 = vsel %vm411_vm12, %v498_v36, 0.0 }
 0x538   :  { %500 = vadd.xlane.f32.xlu2 %v499_v37 }
 0x5ab   :  { %v501_v38 = vpop.xlane.xlu2 %500 }
 0x5ac   :  { %v504_v39 = vadd.f32 %v547_v6, %v501_v38 }
 0x5ae   :  { %506 = vst.msk [vmem:[%s926_s15] sm:$0x3] %vm505_vm3, %v504_v39 }
 0x5af   :  { %515 = vsyncpa [#allocation3], 1 }
 0x5b0   :  { %516 = vsyncpa [#allocation5], 1 }
 0x5b1   :  { %517 = vsyncpa [#allocation8], 1 }

</bundles_post_ra>
